<compile_context>
chip_gen: v5e
topology: v5e:2x2
jax: 0.10.0
libtpu: 0.0.40
codegen_flags: <defaults>
</compile_context>

<pallas_src>
import functools

import jax
import jax.numpy as jnp
from jax import lax
from jax.experimental import pallas as pl
from jax.experimental.pallas import tpu as pltpu


def _cdiv(a, b):
    return (a + b - 1) // b


def _pe_eval_kernel(x_ref, p_ref, o_ref):
    """out = x + pos for one (Bblk, T, D) block (pos broadcast over batch)."""
    o_ref[...] = (x_ref[...] + p_ref[...][None]).astype(o_ref.dtype)


def _pe_train_kernel(seed_ref, x_ref, p_ref, o_ref, *, keep_prob):
    """out = inverted_dropout(x + pos) for one (Bblk, T, D) block.

    seed_ref : SMEM (1,) int32 scalar-prefetch dropout seed
    x_ref    : VMEM (Bblk, T, D) activation block
    p_ref    : VMEM (T, D) positional rows for this sequence tile
    o_ref    : VMEM (Bblk, T, D) output block
    """
    y = x_ref[...] + p_ref[...][None]

    if keep_prob <= 0.0:          # dropout_p >= 1.0 -> everything dropped
        o_ref[...] = jnp.zeros_like(o_ref)
        return
    if keep_prob >= 1.0:          # no-op dropout
        o_ref[...] = y.astype(o_ref.dtype)
        return

    shape = y.shape
    # Unique 32-bit key per grid step (seed mixed with the flattened step id).
    step = pl.program_id(0) * pl.num_programs(1) + pl.program_id(1)
    key = (seed_ref[0].astype(jnp.uint32) * jnp.uint32(0x9E3779B9)
           + step.astype(jnp.uint32) * jnp.uint32(0x85EBCA6B)
           + jnp.uint32(0x1B873593))

    # Per-element counter inside the block (fits int32 for <=4 MiB blocks).
    b_i = lax.broadcasted_iota(jnp.int32, shape, 0)
    r_i = lax.broadcasted_iota(jnp.int32, shape, 1)
    c_i = lax.broadcasted_iota(jnp.int32, shape, 2)
    ctr = (b_i * (shape[1] * shape[2]) + r_i * shape[2] + c_i).astype(jnp.uint32)

    # murmur3 fmix32 finalizer: integer mul / xor / logical shift only.
    # Pure VPU work (free filler while the kernel is HBM-bound) and lowers on
    # both Mosaic and the CPU interpreter (unlike pltpu.prng_*).
    h = ctr ^ key
    h = h ^ (h >> 16)
    h = h * jnp.uint32(0x85EBCA6B)
    h = h ^ (h >> 13)
    h = h * jnp.uint32(0xC2B2AE35)
    h = h ^ (h >> 16)

    # 24-bit uniform, compared as int32 (avoids unsigned-compare corner cases).
    bits = (h >> 8).astype(jnp.int32)
    thresh = jnp.int32(int(keep_prob * float(1 << 24)))

    # One select + one multiply in the activation dtype (v5e-friendly).
    scale = jnp.where(bits < thresh,
                      jnp.asarray(1.0 / keep_prob, y.dtype),
                      jnp.asarray(0.0, y.dtype))
    o_ref[...] = (y * scale).astype(o_ref.dtype)


def positional_encoding_emb_forward(x, position, *, dropout_p=0.0, train=False,
                                    seed=0, seq_block=None, batch_block=None):
    """Pallas TPU equivalent of PositionalEncodingEmb.forward(x).

    x        : (B, S, d_model)
    position : (max_len + 1, d_model) learned positional table
    Returns dropout(x + position[min(arange(S), max_len)][None, :, :]),
    with dropout active only when train=True and dropout_p > 0.
    """
    B, S, D = x.shape
    max_len = position.shape[0] - 1
    assert position.shape[1] == D, "position table width must equal d_model"

    dtype = x.dtype
    itemsize = jnp.dtype(dtype).itemsize
    sub = 16 if dtype == jnp.bfloat16 else 8        # sublane multiple

    # ---- block sizing -------------------------------------------------------
    # Each step should move ~1-4 MiB so the ~0.35us fixed per-step cost is
    # amortized, while 3 arrays x 2 buffers stays <= ~24 MiB (fits the 32 MiB
    # scoped-VMEM default on v5e/v6e and the 64 MiB-physical v7x).
    TARGET_BLOCK_BYTES = 2 << 20
    MAX_BLOCK_BYTES = 4 << 20

    row_bytes = D * itemsize
    max_rows = max(sub, (MAX_BLOCK_BYTES // row_bytes) // sub * sub)
    if seq_block is None:
        # Full seq dim if it fits (block dim == array dim is always legal);
        # otherwise the largest sublane-multiple tile under the cap -- the
        # partial tail block is masked by Pallas (no wrapper pad / slice).
        T = S if S <= max_rows else max_rows
    else:
        T = max(1, min(int(seq_block), S))
        if T < S:
            T = max(sub, (T // sub) * sub)          # keep sublane-divisible
    num_si = _cdiv(S, T)

    if batch_block is None:
        Bblk = int(max(1, min(B, TARGET_BLOCK_BYTES // max(T * row_bytes, 1))))
    else:
        Bblk = int(max(1, min(B, int(batch_block))))
    num_bb = _cdiv(B, Bblk)

    # ---- positional rows: position[min(s, max_len)] for s in [0, S) ---------
    # Pure layout plumbing on a small (S, D) table -- no gather, no
    # data-dependent DMA.  (Matches both branches of the PyTorch forward.)
    if S <= max_len + 1:
        pos_rows = position[:S]
    else:
        pad = jnp.broadcast_to(position[max_len], (S - (max_len + 1), D))
        pos_rows = jnp.concatenate([position, pad], axis=0)
    pos_rows = pos_rows.astype(dtype)

    use_dropout = bool(train) and float(dropout_p) > 0.0
    keep_prob = 1.0 - float(dropout_p)

    if use_dropout:
        kernel = functools.partial(_pe_train_kernel, keep_prob=keep_prob)
        grid_spec = pltpu.PrefetchScalarGridSpec(
            num_scalar_prefetch=1,                   # dropout seed -> SMEM
            grid=(num_si, num_bb),                   # batch innermost: the pos
            in_specs=[                               # tile's block index is
                pl.BlockSpec((Bblk, T, D),           # constant across it, so
                             lambda si, bb, _s: (bb, si, 0)),  # it isn't re-DMA'd.
                pl.BlockSpec((T, D),
                             lambda si, bb, _s: (si, 0)),
            ],
            out_specs=pl.BlockSpec((Bblk, T, D),
                                   lambda si, bb, _s: (bb, si, 0)),
        )
        args = (jnp.asarray([int(seed)], dtype=jnp.int32), x, pos_rows)
    else:
        kernel = _pe_eval_kernel
        grid_spec = pltpu.PrefetchScalarGridSpec(
            num_scalar_prefetch=0,                   # eval: no seed DMA at all
            grid=(num_si, num_bb),
            in_specs=[
                pl.BlockSpec((Bblk, T, D), lambda si, bb: (bb, si, 0)),
                pl.BlockSpec((T, D), lambda si, bb: (si, 0)),
            ],
            out_specs=pl.BlockSpec((Bblk, T, D), lambda si, bb: (bb, si, 0)),
        )
        args = (x, pos_rows)

    return pl.pallas_call(
        kernel,
        out_shape=jax.ShapeDtypeStruct((B, S, D), dtype),
        grid_spec=grid_spec,
        compiler_params=pltpu.CompilerParams(
            dimension_semantics=("parallel", "parallel")),
    )(*args)


if __name__ == "__main__":
    key = jax.random.PRNGKey(0)
    k_pos, k_x, k_pos2, k_x2 = jax.random.split(key, 4)

    # ---- Config A: S < max_len (the `if` branch of the PyTorch forward) -----
    B, S, D, max_len = 2, 8, 128, 100
    position = jax.random.normal(k_pos, (max_len + 1, D), dtype=jnp.float32)
    x = jax.random.normal(k_x, (B, S, D), dtype=jnp.float32)

    out = jax.block_until_ready(positional_encoding_emb_forward(x, position))
    ids = jnp.minimum(jnp.arange(S), max_len)
    ref = x + jnp.take(position, ids, axis=0)[None]
    assert out.shape == (B, S, D) and out.dtype == jnp.float32
    assert jnp.allclose(out, ref, atol=1e-6), "config A mismatch"

    # ---- Config B: S > max_len (`else` branch: trailing rows use row -1),
    # ragged S and ragged B with forced-small blocks so partial tail blocks on
    # BOTH the seq and batch axes are exercised (no wrapper pad/slice).
    B2, S2, D2, max_len2 = 3, 20, 128, 16
    position2 = jax.random.normal(k_pos2, (max_len2 + 1, D2), dtype=jnp.float32)
    x2 = jax.random.normal(k_x2, (B2, S2, D2), dtype=jnp.float32)

    out2 = jax.block_until_ready(
        positional_encoding_emb_forward(x2, position2, seq_block=8, batch_block=2))
    ids2 = jnp.minimum(jnp.arange(S2), max_len2)
    ref2 = x2 + jnp.take(position2, ids2, axis=0)[None]
    assert out2.shape == (B2, S2, D2)
    assert jnp.allclose(out2, ref2, atol=1e-6), "config B mismatch"

    # ---- Training mode: in-kernel inverted dropout with p = 0.5.  Every
    # output element must be either 0 or (x + p) / keep_prob, ~half kept.
    out_tr = jax.block_until_ready(
        positional_encoding_emb_forward(x, position, dropout_p=0.5,
                                        train=True, seed=1234))
    scaled = ref / 0.5
    is_drop = out_tr == 0.0
    is_keep = jnp.abs(out_tr - scaled) <= (1e-5 + 1e-5 * jnp.abs(scaled))
    assert bool(jnp.all(is_drop | is_keep)), "dropout output not in {0, y/keep}"
    keep_frac = float(1.0 - jnp.mean(is_drop.astype(jnp.float32)))
    assert 0.3 < keep_frac < 0.7, f"dropout keep fraction off: {keep_frac}"

    # ---- Edge case: dropout_p = 1.0 in training -> all zeros (no div-by-zero).
    out_all = jax.block_until_ready(
        positional_encoding_emb_forward(x, position, dropout_p=1.0,
                                        train=True, seed=7))
    assert bool(jnp.all(out_all == 0.0)), "dropout_p=1.0 should zero the output"

    print("KERNEL_OK")
</pallas_src>

<mosaic_0001>
module attributes {stable_mosaic.version = 11 : i64} {
  func.func @_pe_eval_kernel(%arg0: i32, %arg1: i32, %arg2: memref<2x8x128xf32, #tpu.memory_space<vmem>>, %arg3: memref<8x128xf32, #tpu.memory_space<vmem>>, %arg4: memref<2x8x128xf32, #tpu.memory_space<vmem>>) attributes {dimension_semantics = [#tpu.dimension_semantics<parallel>, #tpu.dimension_semantics<parallel>], iteration_bounds = array<i64: 1, 1>, scalar_prefetch = 0 : i64, scratch_operands = 0 : i64, tpu.core_type = #tpu.core_type<tc>, window_params = [{transform_indices = @transform_0, window_bounds = array<i64: 2, 8, 128>}, {transform_indices = @transform_1, window_bounds = array<i64: 8, 128>}, {transform_indices = @transform_2, window_bounds = array<i64: 2, 8, 128>}]} {
    %c0 = arith.constant 0 : index
    %c0_0 = arith.constant 0 : index
    %c0_1 = arith.constant 0 : index
    %0 = vector.load %arg2[%c0, %c0_0, %c0_1] : memref<2x8x128xf32, #tpu.memory_space<vmem>>, vector<2x8x128xf32>
    %c0_2 = arith.constant 0 : index
    %c0_3 = arith.constant 0 : index
    %1 = vector.load %arg3[%c0_2, %c0_3] : memref<8x128xf32, #tpu.memory_space<vmem>>, vector<8x128xf32>
    %2 = vector.shape_cast %1 : vector<8x128xf32> to vector<1x8x128xf32>
    %3 = vector.broadcast %2 : vector<1x8x128xf32> to vector<2x8x128xf32>
    %4 = arith.addf %0, %3 : vector<2x8x128xf32>
    %c0_4 = arith.constant 0 : index
    %c0_5 = arith.constant 0 : index
    %c0_6 = arith.constant 0 : index
    %5 = vector.load %arg4[%c0_4, %c0_5, %c0_6] : memref<2x8x128xf32, #tpu.memory_space<vmem>>, vector<2x8x128xf32>
    tpu.vector_store %arg4[%c0_4, %c0_5, %c0_6], %4 {strides = array<i32>} : memref<2x8x128xf32, #tpu.memory_space<vmem>>, vector<2x8x128xf32>,
    return
  }
  func.func @transform_0(%arg0: i32, %arg1: i32) -> (i32, i32, i32) {
    %c0_i32 = arith.constant 0 : i32
    %c0_i32_0 = arith.constant 0 : i32
    return %arg1, %arg0, %c0_i32 : i32, i32, i32
  }
  func.func @transform_1(%arg0: i32, %arg1: i32) -> (i32, i32) {
    %c0_i32 = arith.constant 0 : i32
    %c0_i32_0 = arith.constant 0 : i32
    return %arg0, %c0_i32 : i32, i32
  }
  func.func @transform_2(%arg0: i32, %arg1: i32) -> (i32, i32, i32) {
    %c0_i32 = arith.constant 0 : i32
    %c0_i32_0 = arith.constant 0 : i32
    return %arg1, %arg0, %c0_i32 : i32, i32, i32
  }
}

</mosaic_0001>

<bundles_post_ra>
// kernel: tpu_custom_call.1
= control target key start
LH: loop header
LB: loop body
LE: loop exit
PB: predicated region body
PF: predicated region fallthrough
CT: control target
= control target key end

     0   :  { %7 = vsyncpa [#allocation3], 0  ;;  %s181_s0 = inlined_call_operand.hbm [shape: f32[2,8,128], index: 0, kind: input, shape index: {}]   ;;  %s182_s1 = inlined_call_operand.hbm [shape: f32[8,128], index: 1, kind: input, shape index: {}]   ;;  %s183_s2 = inlined_call_operand.hbm [shape: f32[2,8,128], index: 2, kind: output, shape index: {}]  }
   0x1   :  { %8 = vsyncpa [#allocation6], 0 }
   0x2   :  { %9 = vsyncpa [#allocation4], 0  ;;  %s14_s11 = sshll.u32 %s181_s0, 4  ;;  %s152_s12 = smov [#allocation2]   ;;  %s15_s11 = int_to_ptr.hbm [resolvable:$true] %s14_s11 }
   0x3   :  { %s16_s13 = sshll.u32 %s152_s12, 4  ;;  %s28_s16 = sshll.u32 %s182_s1, 4  ;;  %s17_s13 = int_to_ptr.vmem [resolvable:$true] %s16_s13  ;;  %s29_s16 = int_to_ptr.hbm [resolvable:$true] %s28_s16 }
   0x4   :  { %s153_s17 = smov 128   ;;  %s154_s18 = smov 8  }
   0x5   :  { %22 = dma.hbm_to_vmem [thread:$0]  %s15_s11, 256, %s17_s13, [#allocation3], %s153_s17, %s153_s17, %s154_s18  }
   0x6   :  { %s155_s19 = smov [#allocation5]  }
   0x7   :  { %s30_s20 = sshll.u32 %s155_s19, 4  ;;  %s31_s20 = int_to_ptr.vmem [resolvable:$true] %s30_s20 }
   0x8   :  { %33 = dma.hbm_to_vmem [thread:$0]  %s29_s16, 128, %s31_s20, [#allocation6]  }
   0x9   :  { %146 = dma.done.wait [#allocation3], 256  }
   0xa   :  { %147 = vsyncadd [#allocation3], 4294967040 }
   0xb   :  { %148 = dma.done.wait [#allocation6], 128  }
   0xc   :  { %149 = vsyncadd [#allocation6], 4294967168  ;;  %s156_s0 = smov [#allocation7]   ;;  %s55_s24 = sshll.u32 %s183_s2, 4  ;;  %v42_v0 = vld [vmem:[#allocation2] sm:$0xff]  ;;  %v44_v1 = vld [vmem:[#allocation5] sm:$0xff]  ;;  %s56_s24 = int_to_ptr.hbm [resolvable:$true] %s55_s24 }
   0xd   :  { %s53_s21 = sshll.u32 %s156_s0, 4  ;;  %v43_v2 = vld [vmem:[#allocation2 + $0x8] sm:$0xff]  ;;  %v45_v3 = vadd.f32 %v44_v1, %v42_v0  ;;  %s54_s21 = int_to_ptr.vmem [resolvable:$true] %s53_s21 }
   0xe   :  { %v46_v4 = vadd.f32 %v44_v1, %v43_v2 }
   0xf   :  { %47 = vst [vmem:[#allocation7] sm:$0xff] %v45_v3 }
  0x10   :  { %48 = vst [vmem:[#allocation7 + $0x8] sm:$0xff] %v46_v4 }
  0x11   :  { %61 = dma.vmem_to_hbm [thread:$0]  %s54_s21, 256, %s56_s24, [#allocation4], %s153_s17, %s153_s17, %s154_s18  }
  0x12   :  { %150 = dma.done.wait [#allocation4], 256  }
  0x13   :  { %151 = vsyncadd [#allocation4], 4294967040 }
  0x14   :  { %66 = vsyncpa [#allocation3], 1 }
  0x15   :  { %67 = vsyncpa [#allocation6], 1 }
  0x16   :  { %68 = vsyncpa [#allocation4], 1 }

</bundles_post_ra>
